<compile_context>
chip_gen: v7x
topology: tpu7x:2x2x1
jax: 0.10.0
libtpu: 0.0.40
codegen_flags: <defaults>
</compile_context>

<pallas_src>
import jax
import jax.numpy as jnp
from jax import lax
from jax.experimental import pallas as pl
from jax.experimental.pallas import tpu as pltpu

# ---- scaled-down, deterministic configuration ----
B, L, D_MODEL = 2, 8, 32          # batch, tokens, d_model
N_HEADS = 4
D_KEYS = 16                       # d_keys per head
D_LLM = 64                        # LLM hidden size (scaled down)
VOCAB = 128                       # vocab size (scaled down)
NUM_TOKENS = 32                   # S, text prototypes (1000 in original)
NUM_CLASSES = 3

HE = N_HEADS * D_KEYS             # 64
LOGIT_LANES = 128                 # lane-dense padded logits width

# Packed parameter slab layout (f32 [SLAB_ROWS, 128]) — see pack_params().
_ROW_BKV, _ROW_BQ_BO, _ROW_LN, _ROW_BCLS = 0, 1, 2, 3
_ROW_WCLS = 8                           # rows 8 .. 8+D_LLM        (sublane aligned)
_ROW_BMAP = _ROW_WCLS + D_LLM           # rows 72 .. 72+NUM_TOKENS (sublane aligned)
SLAB_ROWS = _ROW_BMAP + NUM_TOKENS      # 104


# --------------------------------------------------------------------------
# Fused Pallas kernel: entire forward, all intermediates VMEM/vreg resident.
# --------------------------------------------------------------------------
def _all4one_fused_kernel(x_ref, we_ref, wmap_ref, wq_ref, wkv_ref, wo_ref,
                          slab_ref, o_ref):
    f32 = jnp.float32

    # --- unpack the lane-dense parameter slab: one clean (8,128) head tile
    #     plus two sublane-aligned blocks; remaining slicing is on vreg values.
    head = slab_ref[0:8, :]                                       # [8, 128]
    b_kv = head[_ROW_BKV:_ROW_BKV + 1, :]                         # [1, 2*HE]
    b_q = head[_ROW_BQ_BO:_ROW_BQ_BO + 1, 0:HE]                   # [1, HE]
    b_o = head[_ROW_BQ_BO:_ROW_BQ_BO + 1, HE:2 * HE]              # [1, HE]
    gamma = head[_ROW_LN:_ROW_LN + 1, 0:D_LLM]                    # [1, D_LLM]
    beta = head[_ROW_LN:_ROW_LN + 1, D_LLM:2 * D_LLM]             # [1, D_LLM]
    b_cls = head[_ROW_BCLS:_ROW_BCLS + 1, :]                      # [1, 128] padded
    w_cls = slab_ref[_ROW_WCLS:_ROW_WCLS + D_LLM, :]              # [D_LLM, 128] padded
    b_map = slab_ref[_ROW_BMAP:_ROW_BMAP + NUM_TOKENS, :][:, 0:1]  # [S, 1]

    # --- source prototypes: src = W_map @ word_embeddings + b_map -> [S, d_llm]
    #     (equivalent to mapping_layer(we.T).T, computed directly in [S, d_llm]
    #      layout so no transpose is ever materialized)
    src = (
        jnp.dot(wmap_ref[...], we_ref[...], preferred_element_type=f32) + b_map
    )                                                              # [S, D_LLM]

    # --- fused K/V projection: lane-dense 2*HE = 128 output, src read once
    kv = jnp.dot(src, wkv_ref[...], preferred_element_type=f32) + b_kv
    k = kv[:, :HE]                                                 # [S, HE]
    v = kv[:, HE:]                                                 # [S, HE]

    # --- Q projection for the B class tokens only (dead compute on the other
    #     L-1 tokens was eliminated in the wrapper).
    q = jnp.dot(x_ref[...], wq_ref[...], preferred_element_type=f32) + b_q  # [B, HE]

    # --- per-head scaled-softmax cross-attention; exact division (the EUP has
    #     huge slack at this size, so no approx reciprocal / loose tolerance).
    scale = 1.0 / jnp.sqrt(f32(D_KEYS))
    head_outs = []
    for h in range(N_HEADS):                                       # static unroll
        sl = slice(h * D_KEYS, (h + 1) * D_KEYS)
        qh, kh, vh = q[:, sl], k[:, sl], v[:, sl]                  # [*, E]
        scores = lax.dot_general(                                  # [B, S]
            qh, kh, (((1,), (1,)), ((), ())), preferred_element_type=f32
        ) * scale
        m = jnp.max(scores, axis=-1, keepdims=True)
        p = jnp.exp(scores - m)
        a = p / jnp.sum(p, axis=-1, keepdims=True)
        # TODO(synk): attention dropout is identity in eval mode.
        head_outs.append(jnp.dot(a, vh, preferred_element_type=f32))  # [B, E]

    # --- assemble heads once, single K=HE output-projection matmul
    out = jnp.concatenate(head_outs, axis=-1)                          # [B, HE]
    enc = jnp.dot(out, wo_ref[...], preferred_element_type=f32) + b_o  # [B, D_LLM]

    # --- LayerNorm + class head; logits emitted lane-dense (128-wide padded)
    mu = jnp.mean(enc, axis=-1, keepdims=True)
    var = jnp.mean((enc - mu) ** 2, axis=-1, keepdims=True)
    y = (enc - mu) * lax.rsqrt(var + 1e-5) * gamma + beta
    # TODO(synk): head dropout is identity in eval mode.
    o_ref[...] = (
        jnp.dot(y, w_cls, preferred_element_type=f32) + b_cls
    ).astype(o_ref.dtype)


# --------------------------------------------------------------------------
# Host-side packing of the small vector params (done once, not per call).
# --------------------------------------------------------------------------
def pack_params(params):
    slab = jnp.zeros((SLAB_ROWS, 128), jnp.float32)
    slab = slab.at[_ROW_BKV, : 2 * HE].set(params["b_kv"][0])
    slab = slab.at[_ROW_BQ_BO, :HE].set(params["b_q"][0])
    slab = slab.at[_ROW_BQ_BO, HE:2 * HE].set(params["b_o"][0])
    slab = slab.at[_ROW_LN, :D_LLM].set(params["ln_gamma"][0])
    slab = slab.at[_ROW_LN, D_LLM:2 * D_LLM].set(params["ln_beta"][0])
    slab = slab.at[_ROW_BCLS, :NUM_CLASSES].set(params["b_cls"][0])
    slab = slab.at[_ROW_WCLS:_ROW_WCLS + D_LLM, :NUM_CLASSES].set(params["W_cls"])
    slab = slab.at[_ROW_BMAP:_ROW_BMAP + NUM_TOKENS, 0].set(params["b_map"][:, 0])
    # TODO(synk): for production shapes store the big weights in bf16 (MXU
    # operands) while keeping f32 accumulation and f32 VPU/EUP elementwise math.
    return {
        "word_embeddings": params["word_embeddings"],
        "W_map": params["W_map"],
        "W_q": params["W_q"],
        "W_kv": params["W_kv"],
        "W_o": params["W_o"],
        "slab": slab,
    }


def all4one_forward(x_enc, packed):
    # TODO(synk): ts2vec.encode, the Qwen2.5-VL visual tower and the LLM
    # backbone are external pretrained models; x_enc is taken directly as the
    # already-encoded [B, L, d_model] token sequence and the classification
    # head is applied to the reprogrammed class token (position 0).
    Bx = x_enc.shape[0]
    # Dead-compute elimination: only position 0 of each sequence reaches o_ref.
    x_cls = x_enc[:, 0, :]                                   # [B, D_MODEL]

    args = (
        x_cls,
        packed["word_embeddings"],
        packed["W_map"],
        packed["W_q"],
        packed["W_kv"],
        packed["W_o"],
        packed["slab"],
    )
    out_pad = pl.pallas_call(
        _all4one_fused_kernel,
        grid=(1,),
        out_shape=jax.ShapeDtypeStruct((Bx, LOGIT_LANES), jnp.float32),
        in_specs=[pl.BlockSpec(a.shape, lambda i: (0, 0)) for a in args],
        out_specs=pl.BlockSpec((Bx, LOGIT_LANES), lambda i: (0, 0)),
        compiler_params=pltpu.CompilerParams(
            dimension_semantics=("arbitrary",),
        ),
    )(*args)
    return out_pad[:, :NUM_CLASSES]


# --------------------------------------------------------------------------
# Parameter init (deterministic, PyTorch-Linear-style uniform; weights stored
# pre-transposed as [in, out] so no transposes are needed anywhere).
# --------------------------------------------------------------------------
def init_params(key):
    keys = jax.random.split(key, 6)

    def lin(k, fan_in, fan_out):
        kw, kb = jax.random.split(k)
        bound = 1.0 / jnp.sqrt(jnp.float32(fan_in))
        w = jax.random.uniform(kw, (fan_in, fan_out), jnp.float32, -bound, bound)
        b = jax.random.uniform(kb, (1, fan_out), jnp.float32, -bound, bound)
        return w, b

    params = {}
    params["word_embeddings"] = (
        jax.random.normal(keys[0], (VOCAB, D_LLM), jnp.float32) * 0.02
    )
    # mapping layer kept in native [out=S, in=V] layout: src = W_map @ we + b_map
    kw, kb = jax.random.split(keys[1])
    bound = 1.0 / jnp.sqrt(jnp.float32(VOCAB))
    params["W_map"] = jax.random.uniform(
        kw, (NUM_TOKENS, VOCAB), jnp.float32, -bound, bound)
    params["b_map"] = jax.random.uniform(
        kb, (NUM_TOKENS, 1), jnp.float32, -bound, bound)
    params["W_q"], params["b_q"] = lin(keys[2], D_MODEL, HE)
    # K and V projections fused along the output dim: [d_llm, 2*H*E]
    params["W_kv"], params["b_kv"] = lin(keys[3], D_LLM, 2 * HE)
    params["W_o"], params["b_o"] = lin(keys[4], HE, D_LLM)
    params["ln_gamma"] = jnp.ones((1, D_LLM), jnp.float32)
    params["ln_beta"] = jnp.zeros((1, D_LLM), jnp.float32)
    params["W_cls"], params["b_cls"] = lin(keys[5], D_LLM, NUM_CLASSES)
    return params


# --------------------------------------------------------------------------
# Pure-JAX reference (for a correctness sanity check)
# --------------------------------------------------------------------------
def reference_forward(x_enc, params):
    H, E = N_HEADS, D_KEYS
    we = params["word_embeddings"]
    src = params["W_map"] @ we + params["b_map"]                    # [S, d_llm]
    q = x_enc @ params["W_q"] + params["b_q"][0]                    # [B, L, H*E]
    kv = src @ params["W_kv"] + params["b_kv"][0]                   # [S, 2*H*E]
    k, v = kv[:, :HE], kv[:, HE:]
    q = q.reshape(B, L, H, E)
    k = k.reshape(NUM_TOKENS, H, E)
    v = v.reshape(NUM_TOKENS, H, E)
    scores = jnp.einsum("blhe,she->bhls", q, k) / jnp.sqrt(jnp.float32(E))
    a = jax.nn.softmax(scores, axis=-1)
    out = jnp.einsum("bhls,she->blhe", a, v).reshape(B, L, HE)
    enc_out = out @ params["W_o"] + params["b_o"][0]
    cls_tok = enc_out[:, 0, :]
    mu = jnp.mean(cls_tok, axis=-1, keepdims=True)
    var = jnp.mean((cls_tok - mu) ** 2, axis=-1, keepdims=True)
    xn = (cls_tok - mu) / jnp.sqrt(var + 1e-5)
    y = xn * params["ln_gamma"][0] + params["ln_beta"][0]
    return y @ params["W_cls"] + params["b_cls"][0]


if __name__ == "__main__":
    key = jax.random.PRNGKey(0)
    k_param, k_x = jax.random.split(key)
    params = init_params(k_param)
    packed = pack_params(params)
    x_enc = jax.random.normal(k_x, (B, L, D_MODEL), jnp.float32)

    out = jax.block_until_ready(all4one_forward(x_enc, packed))
    with jax.default_matmul_precision("highest"):
        ref = jax.block_until_ready(reference_forward(x_enc, params))

    assert out.shape == (B, NUM_CLASSES)
    # exact softmax division + f32 matmuls -> tight agreement (small residual
    # slack only for accumulation-order differences between MXU and XLA).
    assert jnp.allclose(out, ref, atol=5e-3, rtol=5e-3), float(
        jnp.max(jnp.abs(out - ref)))
    print("KERNEL_OK")
</pallas_src>

<mosaic_0001>
module attributes {stable_mosaic.version = 11 : i64} {
  func.func @_all4one_fused_kernel(%arg0: i32, %arg1: memref<2x32xf32, #tpu.memory_space<vmem>>, %arg2: memref<128x64xf32, #tpu.memory_space<vmem>>, %arg3: memref<32x128xf32, #tpu.memory_space<vmem>>, %arg4: memref<32x64xf32, #tpu.memory_space<vmem>>, %arg5: memref<64x128xf32, #tpu.memory_space<vmem>>, %arg6: memref<64x64xf32, #tpu.memory_space<vmem>>, %arg7: memref<104x128xf32, #tpu.memory_space<vmem>>, %arg8: memref<2x128xf32, #tpu.memory_space<vmem>>) attributes {dimension_semantics = [#tpu.dimension_semantics<arbitrary>], iteration_bounds = array<i64: 1>, scalar_prefetch = 0 : i64, scratch_operands = 0 : i64, tpu.core_type = #tpu.core_type<tc>, window_params = [{pipeline_mode = #tpu.pipeline_mode<synchronous>, transform_indices = @transform_0, window_bounds = array<i64: 2, 32>}, {pipeline_mode = #tpu.pipeline_mode<synchronous>, transform_indices = @transform_1, window_bounds = array<i64: 128, 64>}, {pipeline_mode = #tpu.pipeline_mode<synchronous>, transform_indices = @transform_2, window_bounds = array<i64: 32, 128>}, {pipeline_mode = #tpu.pipeline_mode<synchronous>, transform_indices = @transform_3, window_bounds = array<i64: 32, 64>}, {pipeline_mode = #tpu.pipeline_mode<synchronous>, transform_indices = @transform_4, window_bounds = array<i64: 64, 128>}, {pipeline_mode = #tpu.pipeline_mode<synchronous>, transform_indices = @transform_5, window_bounds = array<i64: 64, 64>}, {pipeline_mode = #tpu.pipeline_mode<synchronous>, transform_indices = @transform_6, window_bounds = array<i64: 104, 128>}, {pipeline_mode = #tpu.pipeline_mode<synchronous>, transform_indices = @transform_7, window_bounds = array<i64: 2, 128>}]} {
    %c0 = arith.constant 0 : index
    %c0_0 = arith.constant 0 : index
    %0 = vector.load %arg7[%c0, %c0_0] : memref<104x128xf32, #tpu.memory_space<vmem>>, vector<8x128xf32>
    %1 = vector.extract_strided_slice %0 {offsets = [0, 0], sizes = [1, 128], strides = [1, 1]} : vector<8x128xf32> to vector<1x128xf32>
    %2 = vector.extract_strided_slice %0 {offsets = [1, 0], sizes = [1, 64], strides = [1, 1]} : vector<8x128xf32> to vector<1x64xf32>
    %3 = vector.extract_strided_slice %0 {offsets = [1, 64], sizes = [1, 64], strides = [1, 1]} : vector<8x128xf32> to vector<1x64xf32>
    %4 = vector.extract_strided_slice %0 {offsets = [2, 0], sizes = [1, 64], strides = [1, 1]} : vector<8x128xf32> to vector<1x64xf32>
    %5 = vector.extract_strided_slice %0 {offsets = [2, 64], sizes = [1, 64], strides = [1, 1]} : vector<8x128xf32> to vector<1x64xf32>
    %6 = vector.extract_strided_slice %0 {offsets = [3, 0], sizes = [1, 128], strides = [1, 1]} : vector<8x128xf32> to vector<1x128xf32>
    %c8 = arith.constant 8 : index
    %c0_1 = arith.constant 0 : index
    %7 = vector.load %arg7[%c8, %c0_1] : memref<104x128xf32, #tpu.memory_space<vmem>>, vector<64x128xf32>
    %c72 = arith.constant 72 : index
    %c0_2 = arith.constant 0 : index
    %8 = vector.load %arg7[%c72, %c0_2] : memref<104x128xf32, #tpu.memory_space<vmem>>, vector<32x128xf32>
    %9 = vector.extract_strided_slice %8 {offsets = [0, 0], sizes = [32, 1], strides = [1, 1]} : vector<32x128xf32> to vector<32x1xf32>
    %c0_3 = arith.constant 0 : index
    %c0_4 = arith.constant 0 : index
    %10 = vector.load %arg3[%c0_3, %c0_4] : memref<32x128xf32, #tpu.memory_space<vmem>>, vector<32x128xf32>
    %c0_5 = arith.constant 0 : index
    %c0_6 = arith.constant 0 : index
    %11 = vector.load %arg2[%c0_5, %c0_6] : memref<128x64xf32, #tpu.memory_space<vmem>>, vector<128x64xf32>
    %cst = arith.constant dense<0.000000e+00> : vector<32x64xf32>
    %12 = tpu.matmul %10, %11, %cst {dimension_numbers = #tpu.dot_dimension_numbers<[1], [0], [0], [1], [0, 0, 1, 1], [], []>} : vector<32x128xf32>, vector<128x64xf32>, vector<32x64xf32> -> vector<32x64xf32>
    %13 = vector.broadcast %9 : vector<32x1xf32> to vector<32x64xf32>
    %14 = arith.addf %12, %13 : vector<32x64xf32>
    %c0_7 = arith.constant 0 : index
    %c0_8 = arith.constant 0 : index
    %15 = vector.load %arg5[%c0_7, %c0_8] : memref<64x128xf32, #tpu.memory_space<vmem>>, vector<64x128xf32>
    %cst_9 = arith.constant dense<0.000000e+00> : vector<32x128xf32>
    %16 = tpu.matmul %14, %15, %cst_9 {dimension_numbers = #tpu.dot_dimension_numbers<[1], [0], [0], [1], [0, 0, 1, 1], [], []>} : vector<32x64xf32>, vector<64x128xf32>, vector<32x128xf32> -> vector<32x128xf32>
    %17 = vector.broadcast %1 : vector<1x128xf32> to vector<32x128xf32>
    %18 = arith.addf %16, %17 : vector<32x128xf32>
    %19 = vector.extract_strided_slice %18 {offsets = [0, 0], sizes = [32, 64], strides = [1, 1]} : vector<32x128xf32> to vector<32x64xf32>
    %20 = vector.extract_strided_slice %18 {offsets = [0, 64], sizes = [32, 64], strides = [1, 1]} : vector<32x128xf32> to vector<32x64xf32>
    %c0_10 = arith.constant 0 : index
    %c0_11 = arith.constant 0 : index
    %21 = vector.load %arg1[%c0_10, %c0_11] : memref<2x32xf32, #tpu.memory_space<vmem>>, vector<2x32xf32>
    %c0_12 = arith.constant 0 : index
    %c0_13 = arith.constant 0 : index
    %22 = vector.load %arg4[%c0_12, %c0_13] : memref<32x64xf32, #tpu.memory_space<vmem>>, vector<32x64xf32>
    %cst_14 = arith.constant dense<0.000000e+00> : vector<2x64xf32>
    %23 = tpu.matmul %21, %22, %cst_14 {dimension_numbers = #tpu.dot_dimension_numbers<[1], [0], [0], [1], [0, 0, 1, 1], [], []>} : vector<2x32xf32>, vector<32x64xf32>, vector<2x64xf32> -> vector<2x64xf32>
    %24 = vector.broadcast %2 : vector<1x64xf32> to vector<2x64xf32>
    %25 = arith.addf %23, %24 : vector<2x64xf32>
    %cst_15 = arith.constant 1.600000e+01 : f32
    %26 = math.sqrt %cst_15 : f32
    %cst_16 = arith.constant 1.000000e+00 : f32
    %27 = arith.divf %cst_16, %26 : f32
    %28 = vector.extract_strided_slice %25 {offsets = [0, 0], sizes = [2, 16], strides = [1, 1]} : vector<2x64xf32> to vector<2x16xf32>
    %29 = vector.extract_strided_slice %19 {offsets = [0, 0], sizes = [32, 16], strides = [1, 1]} : vector<32x64xf32> to vector<32x16xf32>
    %30 = vector.extract_strided_slice %20 {offsets = [0, 0], sizes = [32, 16], strides = [1, 1]} : vector<32x64xf32> to vector<32x16xf32>
    %cst_17 = arith.constant dense<0.000000e+00> : vector<2x32xf32>
    %31 = tpu.matmul %28, %29, %cst_17 {dimension_numbers = #tpu.dot_dimension_numbers<[1], [1], [0], [0], [0, 0, 1, 0], [], []>} : vector<2x16xf32>, vector<32x16xf32>, vector<2x32xf32> -> vector<2x32xf32>
    %32 = vector.broadcast %27 : f32 to vector<2x32xf32>
    %33 = arith.mulf %31, %32 : vector<2x32xf32>
    %cst_18 = arith.constant dense<0xFF800000> : vector<2xf32>
    %34 = vector.multi_reduction <maximumf>, %33, %cst_18 [1] : vector<2x32xf32> to vector<2xf32>
    %35 = vector.shape_cast %34 : vector<2xf32> to vector<2x1xf32>
    %36 = vector.broadcast %35 : vector<2x1xf32> to vector<2x32xf32>
    %37 = arith.subf %33, %36 : vector<2x32xf32>
    %38 = math.exp %37 : vector<2x32xf32>
    %cst_19 = arith.constant dense<0.000000e+00> : vector<2xf32>
    %39 = vector.multi_reduction <add>, %38, %cst_19 [1] : vector<2x32xf32> to vector<2xf32>
    %40 = vector.shape_cast %39 : vector<2xf32> to vector<2x1xf32>
    %41 = vector.broadcast %40 : vector<2x1xf32> to vector<2x32xf32>
    %42 = arith.divf %38, %41 : vector<2x32xf32>
    %cst_20 = arith.constant dense<0.000000e+00> : vector<2x16xf32>
    %43 = tpu.matmul %42, %30, %cst_20 {dimension_numbers = #tpu.dot_dimension_numbers<[1], [0], [0], [1], [0, 0, 1, 1], [], []>} : vector<2x32xf32>, vector<32x16xf32>, vector<2x16xf32> -> vector<2x16xf32>
    %44 = vector.extract_strided_slice %25 {offsets = [0, 16], sizes = [2, 16], strides = [1, 1]} : vector<2x64xf32> to vector<2x16xf32>
    %45 = vector.extract_strided_slice %19 {offsets = [0, 16], sizes = [32, 16], strides = [1, 1]} : vector<32x64xf32> to vector<32x16xf32>
    %46 = vector.extract_strided_slice %20 {offsets = [0, 16], sizes = [32, 16], strides = [1, 1]} : vector<32x64xf32> to vector<32x16xf32>
    %cst_21 = arith.constant dense<0.000000e+00> : vector<2x32xf32>
    %47 = tpu.matmul %44, %45, %cst_21 {dimension_numbers = #tpu.dot_dimension_numbers<[1], [1], [0], [0], [0, 0, 1, 0], [], []>} : vector<2x16xf32>, vector<32x16xf32>, vector<2x32xf32> -> vector<2x32xf32>
    %48 = vector.broadcast %27 : f32 to vector<2x32xf32>
    %49 = arith.mulf %47, %48 : vector<2x32xf32>
    %cst_22 = arith.constant dense<0xFF800000> : vector<2xf32>
    %50 = vector.multi_reduction <maximumf>, %49, %cst_22 [1] : vector<2x32xf32> to vector<2xf32>
    %51 = vector.shape_cast %50 : vector<2xf32> to vector<2x1xf32>
    %52 = vector.broadcast %51 : vector<2x1xf32> to vector<2x32xf32>
    %53 = arith.subf %49, %52 : vector<2x32xf32>
    %54 = math.exp %53 : vector<2x32xf32>
    %cst_23 = arith.constant dense<0.000000e+00> : vector<2xf32>
    %55 = vector.multi_reduction <add>, %54, %cst_23 [1] : vector<2x32xf32> to vector<2xf32>
    %56 = vector.shape_cast %55 : vector<2xf32> to vector<2x1xf32>
    %57 = vector.broadcast %56 : vector<2x1xf32> to vector<2x32xf32>
    %58 = arith.divf %54, %57 : vector<2x32xf32>
    %cst_24 = arith.constant dense<0.000000e+00> : vector<2x16xf32>
    %59 = tpu.matmul %58, %46, %cst_24 {dimension_numbers = #tpu.dot_dimension_numbers<[1], [0], [0], [1], [0, 0, 1, 1], [], []>} : vector<2x32xf32>, vector<32x16xf32>, vector<2x16xf32> -> vector<2x16xf32>
    %60 = vector.extract_strided_slice %25 {offsets = [0, 32], sizes = [2, 16], strides = [1, 1]} : vector<2x64xf32> to vector<2x16xf32>
    %61 = vector.extract_strided_slice %19 {offsets = [0, 32], sizes = [32, 16], strides = [1, 1]} : vector<32x64xf32> to vector<32x16xf32>
    %62 = vector.extract_strided_slice %20 {offsets = [0, 32], sizes = [32, 16], strides = [1, 1]} : vector<32x64xf32> to vector<32x16xf32>
    %cst_25 = arith.constant dense<0.000000e+00> : vector<2x32xf32>
    %63 = tpu.matmul %60, %61, %cst_25 {dimension_numbers = #tpu.dot_dimension_numbers<[1], [1], [0], [0], [0, 0, 1, 0], [], []>} : vector<2x16xf32>, vector<32x16xf32>, vector<2x32xf32> -> vector<2x32xf32>
    %64 = vector.broadcast %27 : f32 to vector<2x32xf32>
    %65 = arith.mulf %63, %64 : vector<2x32xf32>
    %cst_26 = arith.constant dense<0xFF800000> : vector<2xf32>
    %66 = vector.multi_reduction <maximumf>, %65, %cst_26 [1] : vector<2x32xf32> to vector<2xf32>
    %67 = vector.shape_cast %66 : vector<2xf32> to vector<2x1xf32>
    %68 = vector.broadcast %67 : vector<2x1xf32> to vector<2x32xf32>
    %69 = arith.subf %65, %68 : vector<2x32xf32>
    %70 = math.exp %69 : vector<2x32xf32>
    %cst_27 = arith.constant dense<0.000000e+00> : vector<2xf32>
    %71 = vector.multi_reduction <add>, %70, %cst_27 [1] : vector<2x32xf32> to vector<2xf32>
    %72 = vector.shape_cast %71 : vector<2xf32> to vector<2x1xf32>
    %73 = vector.broadcast %72 : vector<2x1xf32> to vector<2x32xf32>
    %74 = arith.divf %70, %73 : vector<2x32xf32>
    %cst_28 = arith.constant dense<0.000000e+00> : vector<2x16xf32>
    %75 = tpu.matmul %74, %62, %cst_28 {dimension_numbers = #tpu.dot_dimension_numbers<[1], [0], [0], [1], [0, 0, 1, 1], [], []>} : vector<2x32xf32>, vector<32x16xf32>, vector<2x16xf32> -> vector<2x16xf32>
    %76 = vector.extract_strided_slice %25 {offsets = [0, 48], sizes = [2, 16], strides = [1, 1]} : vector<2x64xf32> to vector<2x16xf32>
    %77 = vector.extract_strided_slice %19 {offsets = [0, 48], sizes = [32, 16], strides = [1, 1]} : vector<32x64xf32> to vector<32x16xf32>
    %78 = vector.extract_strided_slice %20 {offsets = [0, 48], sizes = [32, 16], strides = [1, 1]} : vector<32x64xf32> to vector<32x16xf32>
    %cst_29 = arith.constant dense<0.000000e+00> : vector<2x32xf32>
    %79 = tpu.matmul %76, %77, %cst_29 {dimension_numbers = #tpu.dot_dimension_numbers<[1], [1], [0], [0], [0, 0, 1, 0], [], []>} : vector<2x16xf32>, vector<32x16xf32>, vector<2x32xf32> -> vector<2x32xf32>
    %80 = vector.broadcast %27 : f32 to vector<2x32xf32>
    %81 = arith.mulf %79, %80 : vector<2x32xf32>
    %cst_30 = arith.constant dense<0xFF800000> : vector<2xf32>
    %82 = vector.multi_reduction <maximumf>, %81, %cst_30 [1] : vector<2x32xf32> to vector<2xf32>
    %83 = vector.shape_cast %82 : vector<2xf32> to vector<2x1xf32>
    %84 = vector.broadcast %83 : vector<2x1xf32> to vector<2x32xf32>
    %85 = arith.subf %81, %84 : vector<2x32xf32>
    %86 = math.exp %85 : vector<2x32xf32>
    %cst_31 = arith.constant dense<0.000000e+00> : vector<2xf32>
    %87 = vector.multi_reduction <add>, %86, %cst_31 [1] : vector<2x32xf32> to vector<2xf32>
    %88 = vector.shape_cast %87 : vector<2xf32> to vector<2x1xf32>
    %89 = vector.broadcast %88 : vector<2x1xf32> to vector<2x32xf32>
    %90 = arith.divf %86, %89 : vector<2x32xf32>
    %cst_32 = arith.constant dense<0.000000e+00> : vector<2x16xf32>
    %91 = tpu.matmul %90, %78, %cst_32 {dimension_numbers = #tpu.dot_dimension_numbers<[1], [0], [0], [1], [0, 0, 1, 1], [], []>} : vector<2x32xf32>, vector<32x16xf32>, vector<2x16xf32> -> vector<2x16xf32>
    %92 = tpu.concatenate %43, %59, %75, %91 in 1 : vector<2x16xf32>, vector<2x16xf32>, vector<2x16xf32>, vector<2x16xf32> -> vector<2x64xf32>
    %c0_33 = arith.constant 0 : index
    %c0_34 = arith.constant 0 : index
    %93 = vector.load %arg6[%c0_33, %c0_34] : memref<64x64xf32, #tpu.memory_space<vmem>>, vector<64x64xf32>
    %cst_35 = arith.constant dense<0.000000e+00> : vector<2x64xf32>
    %94 = tpu.matmul %92, %93, %cst_35 {dimension_numbers = #tpu.dot_dimension_numbers<[1], [0], [0], [1], [0, 0, 1, 1], [], []>} : vector<2x64xf32>, vector<64x64xf32>, vector<2x64xf32> -> vector<2x64xf32>
    %95 = vector.broadcast %3 : vector<1x64xf32> to vector<2x64xf32>
    %96 = arith.addf %94, %95 : vector<2x64xf32>
    %cst_36 = arith.constant dense<0.000000e+00> : vector<2xf32>
    %97 = vector.multi_reduction <add>, %96, %cst_36 [1] : vector<2x64xf32> to vector<2xf32>
    %98 = vector.shape_cast %97 : vector<2xf32> to vector<2x1xf32>
    %cst_37 = arith.constant 6.400000e+01 : f32
    %99 = vector.broadcast %cst_37 : f32 to vector<2x1xf32>
    %100 = arith.divf %98, %99 : vector<2x1xf32>
    %101 = vector.broadcast %100 : vector<2x1xf32> to vector<2x64xf32>
    %102 = arith.subf %96, %101 : vector<2x64xf32>
    %103 = arith.mulf %102, %102 : vector<2x64xf32>
    %cst_38 = arith.constant dense<0.000000e+00> : vector<2xf32>
    %104 = vector.multi_reduction <add>, %103, %cst_38 [1] : vector<2x64xf32> to vector<2xf32>
    %105 = vector.shape_cast %104 : vector<2xf32> to vector<2x1xf32>
    %cst_39 = arith.constant 6.400000e+01 : f32
    %106 = vector.broadcast %cst_39 : f32 to vector<2x1xf32>
    %107 = arith.divf %105, %106 : vector<2x1xf32>
    %108 = vector.broadcast %100 : vector<2x1xf32> to vector<2x64xf32>
    %109 = arith.subf %96, %108 : vector<2x64xf32>
    %cst_40 = arith.constant 9.99999974E-6 : f32
    %110 = vector.broadcast %cst_40 : f32 to vector<2x1xf32>
    %111 = arith.addf %107, %110 : vector<2x1xf32>
    %112 = math.rsqrt %111 : vector<2x1xf32>
    %113 = vector.broadcast %112 : vector<2x1xf32> to vector<2x64xf32>
    %114 = arith.mulf %109, %113 : vector<2x64xf32>
    %115 = vector.broadcast %4 : vector<1x64xf32> to vector<2x64xf32>
    %116 = arith.mulf %114, %115 : vector<2x64xf32>
    %117 = vector.broadcast %5 : vector<1x64xf32> to vector<2x64xf32>
    %118 = arith.addf %116, %117 : vector<2x64xf32>
    %cst_41 = arith.constant dense<0.000000e+00> : vector<2x128xf32>
    %119 = tpu.matmul %118, %7, %cst_41 {dimension_numbers = #tpu.dot_dimension_numbers<[1], [0], [0], [1], [0, 0, 1, 1], [], []>} : vector<2x64xf32>, vector<64x128xf32>, vector<2x128xf32> -> vector<2x128xf32>
    %120 = vector.broadcast %6 : vector<1x128xf32> to vector<2x128xf32>
    %121 = arith.addf %119, %120 : vector<2x128xf32>
    %c0_42 = arith.constant 0 : index
    %c0_43 = arith.constant 0 : index
    %122 = vector.load %arg8[%c0_42, %c0_43] : memref<2x128xf32, #tpu.memory_space<vmem>>, vector<2x128xf32>
    tpu.vector_store %arg8[%c0_42, %c0_43], %121 {strides = array<i32>} : memref<2x128xf32, #tpu.memory_space<vmem>>, vector<2x128xf32>,
    return
  }
  func.func @transform_0(%arg0: i32) -> (i32, i32) {
    %c0_i32 = arith.constant 0 : i32
    %c0_i32_0 = arith.constant 0 : i32
    %c0_i32_1 = arith.constant 0 : i32
    return %c0_i32, %c0_i32_0 : i32, i32
  }
  func.func @transform_1(%arg0: i32) -> (i32, i32) {
    %c0_i32 = arith.constant 0 : i32
    %c0_i32_0 = arith.constant 0 : i32
    %c0_i32_1 = arith.constant 0 : i32
    return %c0_i32, %c0_i32_0 : i32, i32
  }
  func.func @transform_2(%arg0: i32) -> (i32, i32) {
    %c0_i32 = arith.constant 0 : i32
    %c0_i32_0 = arith.constant 0 : i32
    %c0_i32_1 = arith.constant 0 : i32
    return %c0_i32, %c0_i32_0 : i32, i32
  }
  func.func @transform_3(%arg0: i32) -> (i32, i32) {
    %c0_i32 = arith.constant 0 : i32
    %c0_i32_0 = arith.constant 0 : i32
    %c0_i32_1 = arith.constant 0 : i32
    return %c0_i32, %c0_i32_0 : i32, i32
  }
  func.func @transform_4(%arg0: i32) -> (i32, i32) {
    %c0_i32 = arith.constant 0 : i32
    %c0_i32_0 = arith.constant 0 : i32
    %c0_i32_1 = arith.constant 0 : i32
    return %c0_i32, %c0_i32_0 : i32, i32
  }
  func.func @transform_5(%arg0: i32) -> (i32, i32) {
    %c0_i32 = arith.constant 0 : i32
    %c0_i32_0 = arith.constant 0 : i32
    %c0_i32_1 = arith.constant 0 : i32
    return %c0_i32, %c0_i32_0 : i32, i32
  }
  func.func @transform_6(%arg0: i32) -> (i32, i32) {
    %c0_i32 = arith.constant 0 : i32
    %c0_i32_0 = arith.constant 0 : i32
    %c0_i32_1 = arith.constant 0 : i32
    return %c0_i32, %c0_i32_0 : i32, i32
  }
  func.func @transform_7(%arg0: i32) -> (i32, i32) {
    %c0_i32 = arith.constant 0 : i32
    %c0_i32_0 = arith.constant 0 : i32
    %c0_i32_1 = arith.constant 0 : i32
    return %c0_i32, %c0_i32_0 : i32, i32
  }
}

</mosaic_0001>

<bundles_post_ra>
// kernel: tpu_custom_call.1
= control target key start
LH: loop header
LB: loop body
LE: loop exit
PB: predicated region body
PF: predicated region fallthrough
CT: control target
= control target key end

     0   :  { %12 = vsyncpa [#allocation3], 0  ;;  %s2352_s0 = inlined_call_operand.vmem [shape: f32[2,32], index: 0, kind: input, shape index: {}]   ;;  %s2353_s1 = inlined_call_operand.vmem [shape: f32[128,64], index: 1, kind: input, shape index: {}]   ;;  %s2354_s2 = inlined_call_operand.vmem [shape: f32[32,128], index: 2, kind: input, shape index: {}]   ;;  %s2355_s3 = inlined_call_operand.hbm [shape: f32[32,64], index: 3, kind: input, shape index: {}]   ;;  %s2356_s4 = inlined_call_operand.vmem [shape: f32[64,128], index: 4, kind: input, shape index: {}]   ;;  %s2357_s5 = inlined_call_operand.hbm [shape: f32[64,64], index: 5, kind: input, shape index: {}]   ;;  %s2358_s6 = inlined_call_operand.vmem [shape: f32[104,128], index: 6, kind: input, shape index: {}]   ;;  %s2359_s7 = inlined_call_operand.hbm [shape: f32[2,128], index: 7, kind: output, shape index: {}]  }
   0x1   :  { %13 = vsyncpa [#allocation6], 0 }
   0x2   :  { %14 = vsyncpa [#allocation4], 0  ;;  %s1986_s24 = smov [#allocation2]   ;;  %s1914_s28 = scalar_lea.hbm %s2355_s3, 512 }
   0x3   :  { %s26_s25 = sshll.u32 %s1986_s24, 4  ;;  %p1915_p0 = scmp.ne.s32.totalorder %s2355_s3, %s1914_s28  ;;  %s27_s25 = int_to_ptr.vmem [resolvable:$true] %s26_s25 }
   0x4   :  { %p1918_p1 = scmp.lt.u32.totalorder %s1914_s28, %s2355_s3 }
   0x6   :  { %p1920_p2 = pnand %p1918_p1, %p1915_p0 }
   0x8   :  { %1923 = shalt.err (!%p1920_p2)
}
   0x9   :  { %s1924_s10 = scalar_lea.vmem %s27_s25, 512  ;;  %p1929_p4 = scmp.lt.s32.totalorder %s27_s25, %s27_s25 }
   0xa   :  { %p1925_p3 = scmp.ne.s32.totalorder %s27_s25, %s1924_s10  ;;  %p1930_p5 = scmp.lt.s32.totalorder %s1924_s10, %s1924_s10 }
   0xc   :  { %p1931_p6 = por %p1930_p5, %p1929_p4 }
   0xe   :  { %p1932_p7 = pnand %p1931_p6, %p1925_p3 }
  0x10   :  { %1935 = shalt.err (!%p1932_p7)
}
  0x11   :  { %s1987_s11 = smov 128   ;;  %s1988_s12 = smov 8  }
  0x12   :  { %32 = dma.hbm_to_vmem [thread:$0]  %s2355_s3, 512, %s27_s25, [#allocation3], %s1987_s11, %s1987_s11, %s1988_s12  }
  0x13   :  { %s1989_s15 = smov [#allocation5]   ;;  %s1936_s19 = scalar_lea.hbm %s2357_s5, 1024 }
  0x14   :  { %s40_s16 = sshll.u32 %s1989_s15, 4  ;;  %p1937_p8 = scmp.ne.s32.totalorder %s2357_s5, %s1936_s19  ;;  %s41_s16 = int_to_ptr.vmem [resolvable:$true] %s40_s16 }
  0x15   :  { %p1940_p9 = scmp.lt.u32.totalorder %s1936_s19, %s2357_s5 }
  0x17   :  { %p1942_p10 = pnand %p1940_p9, %p1937_p8 }
  0x19   :  { %1945 = shalt.err (!%p1942_p10)
}
  0x1a   :  { %s1946_s24 = scalar_lea.vmem %s41_s16, 1024  ;;  %p1951_p12 = scmp.lt.s32.totalorder %s41_s16, %s41_s16 }
  0x1b   :  { %p1947_p11 = scmp.ne.s32.totalorder %s41_s16, %s1946_s24  ;;  %p1952_p13 = scmp.lt.s32.totalorder %s1946_s24, %s1946_s24 }
  0x1d   :  { %p1953_p0 = por %p1952_p13, %p1951_p12 }
  0x1f   :  { %p1954_p1 = pnand %p1953_p0, %p1947_p11 }
  0x21   :  { %1957 = shalt.err (!%p1954_p1)
}
  0x22   :  { %46 = dma.hbm_to_vmem [thread:$0]  %s2357_s5, 1024, %s41_s16, [#allocation6], %s1987_s11, %s1987_s11, %s1988_s12  }
  0x23   :  { %1980 = dma.done.wait [#allocation3], 512  }
  0x24   :  { %1981 = vsyncadd [#allocation3], 4294966784 }
  0x25   :  { %1982 = dma.done.wait [#allocation6], 1024  }
  0x26   :  { %1983 = vsyncadd [#allocation6], 4294966272  ;;  %v1990_v0 = vmov 0   ;;  %v72_v1 = vld [vmem:[%s2353_s1] sm:$0xff]  ;;  %v73_v2 = vld [vmem:[%s2353_s1 + $0x8] sm:$0xff]  ;;  %v1991_v45 = vmov 0.0|0.0  }
  0x27   :  { %1824 = vset.pattern.permute.xlu0 %v1990_v0  ;;  %1825 = vset.pattern.permute.xlu1 %v1990_v0  ;;  %v74_v3 = vld [vmem:[%s2353_s1 + $0x10] sm:$0xff]  ;;  %v1674_v4 = vpack.c.bf16 %v73_v2, %v72_v1  ;;  %v75_v5 = vld [vmem:[%s2353_s1 + $0x18] sm:$0xff]  ;;  %v76_v7 = vld [vmem:[%s2353_s1 + $0x20] sm:$0xff]  ;;  %vm1992_vm0 = vmmov 0   ;;  %v1993_v46 = vmov 0.0   ;;  %vm205_vm1 = vcmask 523264  }
  0x28   :  { %v1678_v6 = vpack.c.bf16 %v75_v5, %v74_v3  ;;  %v77_v8 = vld [vmem:[%s2353_s1 + $0x28] sm:$0xff]  ;;  %v68_v10 = vld [vmem:[%s2354_s2] sm:$0xff]  ;;  %v78_v11 = vld [vmem:[%s2353_s1 + $0x30] sm:$0xff]  ;;  %vm312_vm2 = vcmask 261120   ;;  %v201_v2 = vlaneseq  ;;  %vm386_vm3 = vcmask 130048   ;;  %s1995_s17 = smov 112  }
  0x29   :  { %1675 = vmatprep.subr.bf16.mxu0 %v1674_v4  ;;  %v1682_v9 = vpack.c.bf16 %v77_v8, %v76_v7  ;;  %v79_v12 = vld [vmem:[%s2353_s1 + $0x38] sm:$0xff]  ;;  %1509 = vmatprep.mubr.f32.mxu0 %v68_v10  ;;  %v64_v13 = vld [vmem:[%s2358_s6 + $0x48] sm:$0xff]  ;;  %v65_v14 = vld [vmem:[%s2358_s6 + $0x50] sm:$0xff]  ;;  %vm473_vm5 = vcmask 254976   ;;  %s1996_s18 = smov 48   ;;  %s1997_s19 = smov 96  }
  0x2a   :  { %1677 = vmatpush3.bf16.msra.mxu0 %v1674_v4  ;;  %90 = vperm.xlu0 %1824, %v64_v13   ;;  %v66_v15 = vld [vmem:[%s2358_s6 + $0x58] sm:$0xff]  ;;  %v193_v16 = vld [vmem:[%s2356_s4] sm:$0xff]  ;;  %v194_v17 = vld [vmem:[%s2356_s4 + $0x8] sm:$0xff]  ;;  %v1686_v19 = vpack.c.bf16 %v79_v12, %v78_v11  ;;  %v2180_v3 = vshrl.u32 %v201_v2, 7  ;;  %s1998_s20 = smov 32   ;;  %s1999_s21 = smov 80  }
  0x2b   :  { %1679 = vmatprep.subr.bf16.mxu0 %v1678_v6  ;;  %100 = vperm.xlu1 %1825, %v66_v15   ;;  %v195_v18 = vld [vmem:[%s2356_s4 + $0x10] sm:$0xff]  ;;  %v67_v20 = vld [vmem:[%s2358_s6 + $0x60] sm:$0xff]  ;;  %v1706_v21 = vpack.c.bf16 %v194_v17, %v193_v16  ;;  %v196_v22 = vld [vmem:[%s2356_s4 + $0x18] sm:$0xff]  ;;  %s2000_s22 = smov 16   ;;  %vm1145_vm6 = vcmask 392192   ;;  %vm1232_vm7 = vcmask 517120  }
  0x2c   :  { %v80_v23 = vld [vmem:[%s2353_s1 + $0x40] sm:$0xff]  ;;  %v81_v24 = vld [vmem:[%s2353_s1 + $0x48] sm:$0xff]  ;;  %v1710_v25 = vpack.c.bf16 %v196_v22, %v195_v18  ;;  %v82_v29 = vld [vmem:[%s2353_s1 + $0x50] sm:$0xff]  ;;  %v203_v4 = vsub.s32 0, %v2180_v3 }
  0x2d   :  { %1707 = vmatprep.subr.bf16.mxu1 %v1706_v21  ;;  %v197_v26 = vld [vmem:[%s2356_s4 + $0x20] sm:$0xff]  ;;  %v198_v27 = vld [vmem:[%s2356_s4 + $0x28] sm:$0xff]  ;;  %v1690_v28 = vpack.c.bf16 %v81_v24, %v80_v23  ;;  %v83_v30 = vld [vmem:[%s2353_s1 + $0x58] sm:$0xff] }
  0x2e   :  { %1681 = vmatpush3.bf16.msra.mxu0 %v1678_v6  ;;  %95 = vperm.xlu0 %1824, %v65_v14   ;;  %v1714_v31 = vpack.c.bf16 %v198_v27, %v197_v26  ;;  %v1694_v32 = vpack.c.bf16 %v83_v30, %v82_v29  ;;  %v84_v33 = vld [vmem:[%s2353_s1 + $0x60] sm:$0xff]  ;;  %v85_v34 = vld [vmem:[%s2353_s1 + $0x68] sm:$0xff]  ;;  %v86_v36 = vld [vmem:[%s2353_s1 + $0x70] sm:$0xff] }
  0x2f   :  { %1683 = vmatprep.subr.bf16.mxu0 %v1682_v9  ;;  %105 = vperm.xlu1 %1825, %v67_v20   ;;  %v1698_v35 = vpack.c.bf16 %v85_v34, %v84_v33  ;;  %v87_v37 = vld [vmem:[%s2353_s1 + $0x78] sm:$0xff]  ;;  %v69_v39 = vld [vmem:[%s2354_s2 + $0x8] sm:$0xff]  ;;  %v70_v40 = vld [vmem:[%s2354_s2 + $0x10] sm:$0xff] }
  0x30   :  { %1709 = vmatpush3.bf16.msra.mxu1 %v1706_v21  ;;  %v1702_v38 = vpack.c.bf16 %v87_v37, %v86_v36  ;;  %v71_v41 = vld [vmem:[%s2354_s2 + $0x18] sm:$0xff]  ;;  %v199_v42 = vld [vmem:[%s2356_s4 + $0x30] sm:$0xff]  ;;  %v304_v49 = vld [vmem:[#allocation2] sm:$0xff]  ;;  %v310_v21 = vsub.s32 1, %v2180_v3 }
  0x31   :  { %1711 = vmatprep.subr.bf16.mxu1 %v1710_v25  ;;  %v200_v43 = vld [vmem:[%s2356_s4 + $0x38] sm:$0xff]  ;;  %v305_v50 = vld [vmem:[#allocation2 + $0x8] sm:$0xff]  ;;  %v306_v58 = vld [vmem:[#allocation2 + $0x10] sm:$0xff] }
  0x32   :  { %1685 = vmatpush3.bf16.msra.mxu0 %v1682_v9  ;;  %v1718_v44 = vpack.c.bf16 %v200_v43, %v199_v42  ;;  %v1723_v56 = vpack.c.bf16 %v305_v50, %v304_v49  ;;  %v307_v59 = vld [vmem:[#allocation2 + $0x18] sm:$0xff]  ;;  %v303_v1 = vld [vmem:[%s2352_s0] sm:$0x3]  ;;  %vm2191_vm4 = vmpackc.low %vm386_vm3, %vm386_vm3  ;;  %s1994_s0 = smov 64  }
  0x33   :  { %1687 = vmatprep.subr.bf16.mxu0 %v1686_v19  ;;  %v1726_v0 = vpack.c.bf16 %v307_v59, %v306_v58  ;;  %v2186_v5 = vld [vmem:[%s2358_s6] sm:$0xff] }
  0x34   :  { %1713 = vmatpush3.bf16.msra.mxu1 %v1710_v25  ;;  %v204_v6 = vrot.slane %v2186_v5, %v203_v4  ;;  %v2206_v23 = vrot.slane %v2186_v5, %v310_v21 }
  0x35   :  { %1715 = vmatprep.subr.bf16.mxu1 %v1714_v31 }
  0x36   :  { %1689 = vmatpush3.bf16.msra.mxu0 %v1686_v19 }
  0x37   :  { %1691 = vmatprep.subr.bf16.mxu0 %v1690_v28 }
  0x38   :  { %1717 = vmatpush3.bf16.msra.mxu1 %v1714_v31 }
  0x39   :  { %1719 = vmatprep.subr.bf16.mxu1 %v1718_v44 }
  0x3a   :  { %1693 = vmatpush3.bf16.msra.mxu0 %v1690_v28 }
  0x3b   :  { %1695 = vmatprep.subr.bf16.mxu0 %v1694_v32 }
  0x3c   :  { %1721 = vmatpush3.bf16.msra.mxu1 %v1718_v44 }
  0x3d   :  { %1722 = vmatprep.subr.bf16.mxu1 %v1991_v45 }
  0x3e   :  { %1697 = vmatpush3.bf16.msra.mxu0 %v1694_v32 }
  0x3f   :  { %1699 = vmatprep.subr.bf16.mxu0 %v1698_v35 }
  0x42   :  { %1701 = vmatpush3.bf16.msra.mxu0 %v1698_v35 }
  0x43   :  { %1703 = vmatprep.subr.bf16.mxu0 %v1702_v38 }
  0x46   :  { %1705 = vmatpush3.bf16.msra.mxu0 %v1702_v38 }
  0x47   :  { %1736 = vmatprep.subr.bf16.mxu0 %v1991_v45 }
  0x49   :  { %1510 = vmatmul.mubr.f32.vlgmr.msra.gmra.mrb[0].mxu0 %v69_v39 }
  0x4a   :  { %1512 = vmatprep.mubr.f32.mxu0 %v70_v40 }
  0x4d   :  { %1513 = vmatmul.mubr.f32.gmra.mrb[2].mxu0 %v71_v41 }
  0x4e   :  { %1567 = vmatprep.mubr.msk.f32.mxu0 %vm1992_vm0, %v1993_v46 }
  0xa9   :  { %v91_v47 = vpop.permute.xlu0 %90 }
  0xaa   :  { %v101_v48 = vpop.permute.xlu1 %100 }
  0xad   :  { %v96_v53 = vpop.permute.xlu0 %95 }
  0xae   :  { %v106_v55 = vpop.permute.xlu1 %105 }
 0x11c   :  { %v1511_v51 = vpop.f32.mrb[0].mxu0 }
 0x11d   :  { %v174_v52 = vpop.f32.mrb[1].mxu0  ;;  %v180_v57 = vadd.f32 %v1511_v51, %v96_v53 }
 0x11e   :  { %v175_v54 = vadd.f32 %v174_v52, %v91_v47 }
 0x120   :  { %v1514_v60 = vpop.f32.mrb[2].mxu0  ;;  %1531 = vmatprep.mubr.msk.f32.mxu1 %vm205_vm1, %v175_v54 }
 0x121   :  { %v184_v61 = vpop.f32.mrb[3].mxu0  ;;  %1532 = vmatmul.mubr.msk.f32.vlgmr.msra.gmra.mrb[0].mxu1 %vm205_vm1, %v180_v57  ;;  %v190_v62 = vadd.f32 %v1514_v60, %v106_v55 }
 0x122   :  { %v185_v63 = vadd.f32 %v184_v61, %v101_v48  ;;  %1724 = vmatpush3.bf16.msra.mxu1 %v1723_v56 }
 0x123   :  { %1725 = vmatprep.subr.bf16.mxu1 %v1991_v45 }
 0x124   :  { %1534 = vmatprep.mubr.msk.f32.mxu1 %vm205_vm1, %v185_v63 }
 0x125   :  { %1535 = vmatmul.mubr.msk.f32.gmra.mrb[2].mxu1 %vm205_vm1, %v190_v62 }
 0x126   :  { %1727 = vmatpush3.bf16.msra.mxu1 %v1726_v0  ;;  %1545 = vmatprep.mubr.msk.f32.mxu1 %vm1992_vm0, %v1993_v46 }
 0x127   :  { %1728 = vmatprep.subr.bf16.mxu1 %v1991_v45 }
 0x129   :  { %1546 = vmatmul.mubr.msk.f32.vlgmr.msra.gmra.mrb[4].mxu1 %vm312_vm2, %v303_v1 }
 0x12a   :  { %1556 = vmatprep.mubr.msk.f32.mxu1 %vm1992_vm0, %v1993_v46 }
 0x1f4   :  { %v1533_v7 = vpop.f32.mrb[0].mxu1 }
 0x1f5   :  { %v290_v8 = vadd.f32 %v1533_v7, %v204_v6  ;;  %v284_v9 = vpop.f32.mrb[1].mxu1 }
 0x1f6   :  { %v285_v10 = vadd.f32 %v284_v9, %v204_v6 }
 0x1f8   :  { %v1536_v12 = vpop.f32.mrb[2].mxu1  ;;  %v1729_v13 = vpack.c.bf16 %v290_v8, %v285_v10  ;;  %v2195_v14 = vpack.i.bf16 %v290_v8, %v285_v10 }
 0x1f9   :  { %v300_v15 = vadd.f32 %v1536_v12, %v204_v6  ;;  %v294_v16 = vpop.f32.mrb[3].mxu1 }
 0x1fa   :  { %v295_v17 = vadd.f32 %v294_v16, %v204_v6  ;;  %1731 = vmatpush3.bf16.xpose.msk.msra.mxu1 %vm2191_vm4, %v1729_v13 }
 0x1fb   :  { %1732 = vmatprep.subr.bf16.mxu1 %v1991_v45 }
 0x1fc   :  { %v2200_v18 = vpack.i.bf16 %v300_v15, %v295_v17  ;;  %v1733_v19 = vpack.c.bf16 %v300_v15, %v295_v17  ;;  %v382_v20 = vpop.f32.mrb[4].mxu1 }
 0x1fd   :  { %v1547_v22 = vpop.f32.mrb[5].mxu1  ;;  %v2212_v24 = vadd.f32 %v382_v20, %v2206_v23 }
 0x1fe   :  { %1832 = vrot.lane.b32.xlu1 %v2200_v18, %s1994_s0 }
 0x202   :  { %1735 = vmatpush3.bf16.xpose.msk.msra.mxu1 %vm2191_vm4, %v1733_v19 }
 0x203   :  { %1750 = vmatprep.subr.bf16.mxu1 %v1991_v45 }
 0x209   :  { %1557 = vmatmul.mubr.msk.f32.vlgmr.msra.gmra.mrb[6].mxu1 %vm386_vm3, %v2212_v24 }
 0x20a   :  { %1589 = vmatprep.mubr.msk.f32.mxu1 %vm1992_vm0, %v1993_v46 }
 0x270   :  { %v1833_v32 = vpop.permute.xlu1 %1832 }
 0x271   :  { %v1835_v36 = vunpack.i.h.bf16 %v1833_v32  ;;  %v1834_v37 = vunpack.i.l.bf16 %v1833_v32 }
 0x273   :  { %v1740_v39 = vpack.c.bf16 %v1835_v36, %v1834_v37 }
 0x2dc   :  { %v468_v25 = vpop.f32.mrb[6].mxu1 }
 0x2dd   :  { %v472_v26 = vmul.f32 0.25, %v468_v25  ;;  %v1558_v27 = vpop.f32.mrb[7].mxu1 }
 0x2df   :  { %v474_v28 = vsel %vm473_vm5, %v472_v26, -inf }
 0x2e0   :  { %475 = vmax.xlane.f32.xlu0 %v474_v28 }
 0x2f6   :  { %1827 = vrot.lane.b32.xlu0 %v2195_v14, %s1994_s0 }
 0x2fa   :  { %1837 = vrot.lane.b32.xlu0 %v2195_v14, %s1995_s17 }
 0x2fe   :  { %570 = vrot.lane.b32.xlu0 %v2212_v24, %s1995_s17 }
 0x36d   :  { %v476_v29 = vpop.xlane.xlu0 %475 }
 0x36e   :  { %v477_v30 = vsub.f32 %v472_v26, %v476_v29 }
 0x370   :  { %v478_v31 = vmul.f32 1.442695, %v477_v30 }
 0x371   :  { %v1828_v33 = vpop.permute.xlu0 %1827 }
 0x372   :  { %1896 = vpow2.f32 %v478_v31  ;;  %v1830_v34 = vunpack.i.h.bf16 %v1828_v33  ;;  %v1829_v35 = vunpack.i.l.bf16 %v1828_v33 }
 0x374   :  { %v1737_v38 = vpack.c.bf16 %v1830_v34, %v1829_v35 }
 0x375   :  { %v1838_v43 = vpop.permute.xlu0 %1837 }
 0x376   :  { %1738 = vmatpush3.bf16.msra.mxu0 %v1737_v38  ;;  %v1840_v44 = vunpack.i.h.bf16 %v1838_v43  ;;  %v1839_v47 = vunpack.i.l.bf16 %v1838_v43 }
 0x377   :  { %1739 = vmatprep.subr.bf16.mxu0 %v1991_v45 }
 0x378   :  { %v1743_v50 = vpack.c.bf16 %v1840_v44, %v1839_v47 }
 0x379   :  { %v571_v55 = vpop.permute.xlu0 %570 }
 0x37a   :  { %1741 = vmatpush3.bf16.msra.mxu0 %v1740_v39 }
 0x37b   :  { %1742 = vmatprep.subr.bf16.mxu0 %v1991_v45 }
 0x37c   :  { %v1897_v40 = vpop.eup %1896 }
 0x37d   :  { %v480_v41 = vsel %vm473_vm5, %v1897_v40, 0.0 }
 0x37e   :  { %481 = vadd.xlane.f32.xlu1 %v480_v41 }
 0x38f   :  { %1842 = vrot.lane.b32.xlu1 %v2200_v18, %s1995_s17 }
 0x40b   :  { %v482_v42 = vpop.xlane.xlu1 %481 }
 0x40c   :  { %1898 = vrcp.f32 %v482_v42 }
 0x40f   :  { %v1843_v51 = vpop.permute.xlu1 %1842 }
 0x410   :  { %v1845_v52 = vunpack.i.h.bf16 %v1843_v51  ;;  %v1844_v53 = vunpack.i.l.bf16 %v1843_v51 }
 0x412   :  { %v1747_v54 = vpack.c.bf16 %v1845_v52, %v1844_v53 }
 0x416   :  { %v1899_v48 = vpop.eup %1898 }
 0x417   :  { %v484_v49 = vmul.f32 %v1899_v48, %v1897_v40 }
 0x419   :  { %1568 = vmatmul.mubr.msk.f32.vlgmr.msra.gmra.mrb[4].mxu0 %vm312_vm2, %v484_v49 }
 0x41a   :  { %1745 = vmatpush3.bf16.xpose.msk.msra.mxu0 %vm2191_vm4, %v1743_v50  ;;  %1578 = vmatprep.mubr.msk.f32.mxu0 %vm1992_vm0, %v1993_v46 }
 0x41b   :  { %1746 = vmatprep.subr.bf16.mxu0 %v1991_v45 }
 0x422   :  { %1749 = vmatpush3.bf16.xpose.msk.msra.mxu0 %vm2191_vm4, %v1747_v54 }
 0x423   :  { %1764 = vmatprep.subr.bf16.mxu0 %v1991_v45 }
 0x429   :  { %1579 = vmatmul.mubr.msk.f32.vlgmr.msra.gmra.mrb[6].mxu0 %vm386_vm3, %v571_v55 }
 0x42a   :  { %1611 = vmatprep.mubr.msk.f32.mxu0 %vm1992_vm0, %v1993_v46 }
 0x4ec   :  { %v2239_v56 = vpop.f32.mrb[4].mxu0 }
 0x4ed   :  { %v1569_v57 = vpop.f32.mrb[5].mxu0 }
 0x4fc   :  { %v656_v58 = vpop.f32.mrb[6].mxu0 }
 0x4fd   :  { %v660_v59 = vmul.f32 0.25, %v656_v58  ;;  %v1580_v60 = vpop.f32.mrb[7].mxu0 }
 0x4ff   :  { %v661_v61 = vsel %vm473_vm5, %v660_v59, -inf }
 0x500   :  { %662 = vmax.xlane.f32.xlu1 %v661_v61 }
 0x511   :  { %1852 = vrot.lane.b32.xlu1 %v2200_v18, %s1996_s18 }
 0x515   :  { %1857 = vrot.lane.b32.xlu1 %v2195_v14, %s1997_s19 }
 0x519   :  { %757 = vrot.lane.b32.xlu1 %v2212_v24, %s1997_s19 }
 0x51d   :  { %1872 = vrot.lane.b32.xlu1 %v2200_v18, %s1998_s20 }
 0x58d   :  { %v663_v62 = vpop.xlane.xlu1 %662 }
 0x58e   :  { %v664_v63 = vsub.f32 %v660_v59, %v663_v62 }
 0x590   :  { %v665_v0 = vmul.f32 1.442695, %v664_v63 }
 0x591   :  { %v1853_v6 = vpop.permute.xlu1 %1852 }
 0x592   :  { %1900 = vpow2.f32 %v665_v0  ;;  %v1855_v10 = vunpack.i.h.bf16 %v1853_v6  ;;  %v1854_v12 = vunpack.i.l.bf16 %v1853_v6 }
 0x594   :  { %v1754_v16 = vpack.c.bf16 %v1855_v10, %v1854_v12 }
 0x595   :  { %v1858_v17 = vpop.permute.xlu1 %1857 }
 0x596   :  { %v1860_v20 = vunpack.i.h.bf16 %v1858_v17  ;;  %v1859_v21 = vunpack.i.l.bf16 %v1858_v17 }
 0x598   :  { %v1757_v22 = vpack.c.bf16 %v1860_v20, %v1859_v21 }
 0x599   :  { %v758_v29 = vpop.permute.xlu1 %757 }
 0x59c   :  { %v1901_v1 = vpop.eup %1900 }
 0x59d   :  { %v667_v2 = vsel %vm473_vm5, %v1901_v1, 0.0  ;;  %v1873_v39 = vpop.permute.xlu1 %1872 }
 0x59e   :  { %668 = vadd.xlane.f32.xlu0 %v667_v2  ;;  %v1875_v43 = vunpack.i.h.bf16 %v1873_v39  ;;  %v1874_v44 = vunpack.i.l.bf16 %v1873_v39 }
 0x5a0   :  { %v1768_v48 = vpack.c.bf16 %v1875_v43, %v1874_v44 }
 0x5b4   :  { %1847 = vrot.lane.b32.xlu0 %v2195_v14, %s1996_s18 }
 0x5b8   :  { %1862 = vrot.lane.b32.xlu0 %v2200_v18, %s1997_s19 }
 0x62b   :  { %v669_v4 = vpop.xlane.xlu0 %668 }
 0x62c   :  { %1902 = vrcp.f32 %v669_v4 }
 0x62f   :  { %v1848_v7 = vpop.permute.xlu0 %1847 }
 0x630   :  { %v1850_v8 = vunpack.i.h.bf16 %v1848_v7  ;;  %v1849_v9 = vunpack.i.l.bf16 %v1848_v7 }
 0x632   :  { %v1751_v13 = vpack.c.bf16 %v1850_v8, %v1849_v9 }
 0x633   :  { %v1863_v25 = vpop.permute.xlu0 %1862 }
 0x634   :  { %1752 = vmatpush3.bf16.msra.mxu1 %v1751_v13  ;;  %v1865_v26 = vunpack.i.h.bf16 %v1863_v25  ;;  %v1864_v27 = vunpack.i.l.bf16 %v1863_v25  ;;  %v1148_v25 = vld [vmem:[#allocation5 + $0x8] sm:$0xff] }
 0x635   :  { %1753 = vmatprep.subr.bf16.mxu1 %v1991_v45 }
 0x636   :  { %v1903_v15 = vpop.eup %1902  ;;  %v1761_v28 = vpack.c.bf16 %v1865_v26, %v1864_v27  ;;  %v1149_v26 = vld [vmem:[#allocation5 + $0x10] sm:$0xff] }
 0x637   :  { %v671_v19 = vmul.f32 %v1903_v15, %v1901_v1 }
 0x638   :  { %1755 = vmatpush3.bf16.msra.mxu1 %v1754_v16 }
 0x639   :  { %1756 = vmatprep.subr.bf16.mxu1 %v1991_v45 }
 0x63b   :  { %1590 = vmatmul.mubr.msk.f32.vlgmr.msra.gmra.mrb[8].mxu1 %vm312_vm2, %v671_v19 }
 0x63c   :  { %1600 = vmatprep.mubr.msk.f32.mxu1 %vm1992_vm0, %v1993_v46 }
 0x641   :  { %1759 = vmatpush3.bf16.xpose.msk.msra.mxu1 %vm2191_vm4, %v1757_v22 }
 0x642   :  { %1760 = vmatprep.subr.bf16.mxu1 %v1991_v45 }
 0x649   :  { %1763 = vmatpush3.bf16.xpose.msk.msra.mxu1 %vm2191_vm4, %v1761_v28  ;;  %v1150_v28 = vld [vmem:[#allocation5 + $0x18] sm:$0xff] }
 0x64a   :  { %1778 = vmatprep.subr.bf16.mxu1 %v1991_v45 }
 0x650   :  { %1601 = vmatmul.mubr.msk.f32.vlgmr.msra.gmra.mrb[10].mxu1 %vm386_vm3, %v758_v29  ;;  %v1788_v29 = vpack.c.bf16 %v1150_v28, %v1149_v26 }
 0x651   :  { %1633 = vmatprep.mubr.msk.f32.mxu1 %vm1992_vm0, %v1993_v46 }
 0x70e   :  { %v753_v30 = vpop.f32.mrb[8].mxu1 }
 0x70f   :  { %v1591_v31 = vpop.f32.mrb[9].mxu1 }
 0x710   :  { %v1152_v31 = vld [vmem:[#allocation5 + $0x28] sm:$0xff] }
 0x723   :  { %v843_v32 = vpop.f32.mrb[10].mxu1 }
 0x724   :  { %v847_v33 = vmul.f32 0.25, %v843_v32  ;;  %v1602_v34 = vpop.f32.mrb[11].mxu1 }
 0x725   :  { %v1154_v34 = vld [vmem:[#allocation5 + $0x38] sm:$0xff] }
 0x726   :  { %v848_v35 = vsel %vm473_vm5, %v847_v33, -inf }
 0x727   :  { %849 = vmax.xlane.f32.xlu0 %v848_v35 }
 0x73d   :  { %1867 = vrot.lane.b32.xlu0 %v2195_v14, %s1998_s20 }
 0x741   :  { %1877 = vrot.lane.b32.xlu0 %v2195_v14, %s1999_s21 }
 0x745   :  { %944 = vrot.lane.b32.xlu0 %v2212_v24, %s1999_s21 }
 0x7b4   :  { %v850_v36 = vpop.xlane.xlu0 %849 }
 0x7b5   :  { %v851_v37 = vsub.f32 %v847_v33, %v850_v36  ;;  %v1153_v33 = vld [vmem:[#allocation5 + $0x30] sm:$0xff] }
 0x7b6   :  { %v1794_v35 = vpack.c.bf16 %v1154_v34, %v1153_v33 }
 0x7b7   :  { %v852_v38 = vmul.f32 1.442695, %v851_v37 }
 0x7b8   :  { %v1868_v40 = vpop.permute.xlu0 %1867 }
 0x7b9   :  { %1904 = vpow2.f32 %v852_v38  ;;  %v1870_v41 = vunpack.i.h.bf16 %v1868_v40  ;;  %v1869_v42 = vunpack.i.l.bf16 %v1868_v40 }
 0x7bb   :  { %v1765_v47 = vpack.c.bf16 %v1870_v41, %v1869_v42 }
 0x7bc   :  { %v1878_v51 = vpop.permute.xlu0 %1877 }
 0x7bd   :  { %1766 = vmatpush3.bf16.msra.mxu0 %v1765_v47  ;;  %v1880_v52 = vunpack.i.h.bf16 %v1878_v51  ;;  %v1879_v53 = vunpack.i.l.bf16 %v1878_v51 }
 0x7be   :  { %1767 = vmatprep.subr.bf16.mxu0 %v1991_v45 }
 0x7bf   :  { %v1771_v57 = vpack.c.bf16 %v1880_v52, %v1879_v53 }
 0x7c0   :  { %v945_v62 = vpop.permute.xlu0 %944 }
 0x7c1   :  { %1769 = vmatpush3.bf16.msra.mxu0 %v1768_v48 }
 0x7c2   :  { %1770 = vmatprep.subr.bf16.mxu0 %v1991_v45 }
 0x7c3   :  { %v1905_v49 = vpop.eup %1904 }
 0x7c4   :  { %v854_v24 = vsel %vm473_vm5, %v1905_v49, 0.0 }
 0x7c5   :  { %855 = vadd.xlane.f32.xlu1 %v854_v24 }
 0x7d6   :  { %1882 = vrot.lane.b32.xlu1 %v2200_v18, %s1999_s21 }
 0x852   :  { %v856_v50 = vpop.xlane.xlu1 %855 }
 0x853   :  { %1906 = vrcp.f32 %v856_v50 }
 0x856   :  { %v1883_v58 = vpop.permute.xlu1 %1882 }
 0x857   :  { %v1885_v59 = vunpack.i.h.bf16 %v1883_v58  ;;  %v1884_v60 = vunpack.i.l.bf16 %v1883_v58 }
 0x859   :  { %v1775_v61 = vpack.c.bf16 %v1885_v59, %v1884_v60  ;;  %v58_v59 = vld [vmem:[%s2358_s6 + $0x18] sm:$0xff]  ;;  %v59_v60 = vld [vmem:[%s2358_s6 + $0x20] sm:$0xff] }
 0x85d   :  { %v1907_v54 = vpop.eup %1906 }
 0x85e   :  { %v858_v55 = vmul.f32 %v1907_v54, %v1905_v49  ;;  %v56_v54 = vld [vmem:[%s2358_s6 + $0x8] sm:$0xff] }
 0x860   :  { %1612 = vmatmul.mubr.msk.f32.vlgmr.msra.gmra.mrb[8].mxu0 %vm312_vm2, %v858_v55  ;;  %v57_v55 = vld [vmem:[%s2358_s6 + $0x10] sm:$0xff] }
 0x861   :  { %1773 = vmatpush3.bf16.xpose.msk.msra.mxu0 %vm2191_vm4, %v1771_v57  ;;  %1622 = vmatprep.mubr.msk.f32.mxu0 %vm1992_vm0, %v1993_v46  ;;  %v1797_v58 = vpack.c.bf16 %v57_v55, %v56_v54 }
 0x862   :  { %1774 = vmatprep.subr.bf16.mxu0 %v1991_v45 }
 0x869   :  { %1777 = vmatpush3.bf16.xpose.msk.msra.mxu0 %vm2191_vm4, %v1775_v61  ;;  %v1800_v61 = vpack.c.bf16 %v59_v60, %v58_v59 }
 0x86a   :  { %1796 = vmatprep.subr.bf16.mxu0 %v1991_v45 }
 0x870   :  { %1623 = vmatmul.mubr.msk.f32.vlgmr.msra.gmra.mrb[10].mxu0 %vm386_vm3, %v945_v62  ;;  %v60_v62 = vld [vmem:[%s2358_s6 + $0x28] sm:$0xff] }
 0x871   :  { %1671 = vmatprep.mubr.msk.f32.mxu0 %vm1992_vm0, %v1993_v46  ;;  %1798 = vmatpush3.bf16.msra.mxu0 %v1797_v58 }
 0x872   :  { %1799 = vmatprep.subr.bf16.mxu0 %v1991_v45 }
 0x875   :  { %1801 = vmatpush3.bf16.msra.mxu0 %v1800_v61 }
 0x876   :  { %1802 = vmatprep.subr.bf16.mxu0 %v1991_v45 }
 0x933   :  { %v940_v63 = vpop.f32.mrb[8].mxu0 }
 0x934   :  { %v1613_v0 = vpop.f32.mrb[9].mxu0 }
 0x943   :  { %v1030_v1 = vpop.f32.mrb[10].mxu0 }
 0x944   :  { %v1034_v2 = vmul.f32 0.25, %v1030_v1  ;;  %v1624_v4 = vpop.f32.mrb[11].mxu0  ;;  %v62_v1 = vld [vmem:[%s2358_s6 + $0x38] sm:$0xff] }
 0x946   :  { %v1035_v6 = vsel %vm473_vm5, %v1034_v2, -inf }
 0x947   :  { %1036 = vmax.xlane.f32.xlu1 %v1035_v6 }
 0x958   :  { %1892 = vrot.lane.b32.xlu1 %v2200_v18, %s2000_s22 }
 0x95c   :  { %1132 = vrot.lane.b32.xlu1 %v753_v30, %s2000_s22  ;;  %v1151_v30 = vld [vmem:[#allocation5 + $0x20] sm:$0xff] }
 0x95d   :  { %v1791_v32 = vpack.c.bf16 %v1152_v31, %v1151_v30 }
 0x9d4   :  { %v1037_v11 = vpop.xlane.xlu1 %1036 }
 0x9d5   :  { %v1038_v7 = vsub.f32 %v1034_v2, %v1037_v11  ;;  %v63_v2 = vld [vmem:[%s2358_s6 + $0x40] sm:$0xff] }
 0x9d6   :  { %v1806_v4 = vpack.c.bf16 %v63_v2, %v62_v1 }
 0x9d7   :  { %v1039_v8 = vmul.f32 1.442695, %v1038_v7 }
 0x9d8   :  { %v1893_v13 = vpop.permute.xlu1 %1892 }
 0x9d9   :  { %1908 = vpow2.f32 %v1039_v8  ;;  %v1895_v17 = vunpack.i.h.bf16 %v1893_v13  ;;  %v1894_v19 = vunpack.i.l.bf16 %v1893_v13 }
 0x9db   :  { %v1782_v22 = vpack.c.bf16 %v1895_v17, %v1894_v19 }
 0x9dc   :  { %v1133_v37 = vpop.permute.xlu1 %1132 }
 0x9dd   :  { %v1143_v39 = vsel %vm386_vm3, %v2239_v56, %v1133_v37  ;;  %v1249_v56 = vsub.s32 2, %v2180_v3 }
 0x9df   :  { %v1250_v57 = vrot.slane %v2186_v5, %v1249_v56 }
 0x9e3   :  { %v1909_v9 = vpop.eup %1908 }
 0x9e4   :  { %v1041_v10 = vsel %vm473_vm5, %v1909_v9, 0.0 }
 0x9e5   :  { %1042 = vadd.xlane.f32.xlu0 %v1041_v10 }
 0x9fb   :  { %1887 = vrot.lane.b32.xlu0 %v2195_v14, %s2000_s22 }
 0x9ff   :  { %1136 = vrot.lane.b32.xlu0 %v940_v63, %s1998_s20  ;;  %v61_v63 = vld [vmem:[%s2358_s6 + $0x30] sm:$0xff]  ;;  %s2001_s6 = smov [#allocation7]  }
 0xa00   :  { %v1803_v0 = vpack.c.bf16 %v61_v63, %v60_v62  ;;  %s1341_s13 = sshll.u32 %s2001_s6, 4  ;;  %s1342_s13 = int_to_ptr.vmem [resolvable:$true] %s1341_s13 }
 0xa01   :  { %s1958_s14 = scalar_lea.vmem %s1342_s13, 32  ;;  %p1963_p3 = scmp.lt.s32.totalorder %s1342_s13, %s1342_s13 }
 0xa02   :  { %1804 = vmatpush3.bf16.msra.mxu0 %v1803_v0  ;;  %p1959_p2 = scmp.ne.s32.totalorder %s1342_s13, %s1958_s14  ;;  %p1964_p4 = scmp.lt.s32.totalorder %s1958_s14, %s1958_s14 }
 0xa03   :  { %1156 = vrot.lane.b32.xlu0 %v2206_v23, %s1994_s0  ;;  %v1147_v23 = vld [vmem:[#allocation5] sm:$0xff]  ;;  %1805 = vmatprep.subr.bf16.mxu0 %v1991_v45 }
 0xa04   :  { %v1785_v27 = vpack.c.bf16 %v1148_v25, %v1147_v23  ;;  %p1965_p5 = por %p1964_p4, %p1963_p3 }
 0xa06   :  { %1807 = vmatpush3.bf16.msra.mxu0 %v1806_v4  ;;  %p1966_p6 = pnand %p1965_p5, %p1959_p2 }
 0xa72   :  { %v1043_v12 = vpop.xlane.xlu0 %1042 }
 0xa73   :  { %1910 = vrcp.f32 %v1043_v12 }
 0xa76   :  { %v1888_v18 = vpop.permute.xlu0 %1887 }
 0xa77   :  { %v1890_v15 = vunpack.i.h.bf16 %v1888_v18  ;;  %v1889_v16 = vunpack.i.l.bf16 %v1888_v18  ;;  %v1259_v18 = vsub.s32 3, %v2180_v3 }
 0xa79   :  { %v1779_v20 = vpack.c.bf16 %v1890_v15, %v1889_v16  ;;  %v1260_v15 = vrot.slane %v2186_v5, %v1259_v18 }
 0xa7a   :  { %v1137_v38 = vpop.permute.xlu0 %1136 }
 0xa7b   :  { %1780 = vmatpush3.bf16.msra.mxu1 %v1779_v20  ;;  %v1144_v40 = vsel %vm312_vm2, %v1143_v39, %v1137_v38 }
 0xa7c   :  { %1781 = vmatprep.subr.bf16.mxu1 %v1991_v45 }
 0xa7d   :  { %v1911_v21 = vpop.eup %1910 }
 0xa7e   :  { %v1045_v14 = vmul.f32 %v1911_v21, %v1909_v9  ;;  %v1157_v43 = vpop.permute.xlu0 %1156 }
 0xa7f   :  { %1783 = vmatpush3.bf16.msra.mxu1 %v1782_v22 }
 0xa80   :  { %1784 = vmatprep.subr.bf16.mxu1 %v1991_v45 }
 0xa82   :  { %1634 = vmatmul.mubr.msk.f32.vlgmr.msra.gmra.mrb[12].mxu1 %vm312_vm2, %v1045_v14 }
 0xa83   :  { %1652 = vmatprep.mubr.msk.f32.mxu1 %vm1992_vm0, %v1993_v46  ;;  %1786 = vmatpush3.bf16.msra.mxu1 %v1785_v27 }
 0xa84   :  { %1787 = vmatprep.subr.bf16.mxu1 %v1991_v45 }
 0xa87   :  { %1789 = vmatpush3.bf16.msra.mxu1 %v1788_v29 }
 0xa88   :  { %1790 = vmatprep.subr.bf16.mxu1 %v1991_v45 }
 0xa8b   :  { %1792 = vmatpush3.bf16.msra.mxu1 %v1791_v32 }
 0xa8c   :  { %1793 = vmatprep.subr.bf16.mxu1 %v1991_v45 }
 0xa8f   :  { %1795 = vmatpush3.bf16.msra.mxu1 %v1794_v35 }
 0xb55   :  { %v1127_v46 = vpop.f32.mrb[12].mxu1 }
 0xb56   :  { %1140 = vrot.lane.b32.xlu1 %v1127_v46, %s1996_s18  ;;  %v1635_v36 = vpop.f32.mrb[13].mxu1 }
 0xbc8   :  { %v1141_v41 = vpop.permute.xlu1 %1140 }
 0xbc9   :  { %v1146_v42 = vsel %vm1145_vm6, %v1144_v40, %v1141_v41 }
 0xbca   :  { %1653 = vmatmul.mubr.msk.f32.vlgmr.msra.gmra.mrb[14].mxu1 %vm205_vm1, %v1146_v42 }
 0xc9d   :  { %v1228_v44 = vpop.f32.mrb[14].mxu1 }
 0xc9e   :  { %v1229_v47 = vadd.f32 %v1228_v44, %v1157_v43  ;;  %v1654_v48 = vpop.f32.mrb[15].mxu1 }
 0xca0   :  { %v1233_v49 = vsel %vm1232_vm7, %v1229_v47, 0.0 }
 0xca1   :  { %1234 = vadd.xlane.f32.xlu1 %v1233_v49 }
 0xd2e   :  { %v1235_v24 = vpop.xlane.xlu1 %1234 }
 0xd2f   :  { %v1237_v50 = vmul.f32 0.015625, %v1235_v24 }
 0xd31   :  { %v1238_v51 = vsub.f32 %v1229_v47, %v1237_v50 }
 0xd33   :  { %v1239_v52 = vmul.f32 %v1238_v51, %v1238_v51 }
 0xd35   :  { %v1240_v53 = vsel %vm1232_vm7, %v1239_v52, 0.0 }
 0xd36   :  { %1241 = vadd.xlane.f32.xlu0 %v1240_v53 }
 0xd4c   :  { %1253 = vrot.lane.b32.xlu0 %v1250_v57, %s1994_s0 }
 0xdc3   :  { %v1242_v6 = vpop.xlane.xlu0 %1241 }
 0xdc4   :  { %v1243_v11 = vmul.f32 0.015625, %v1242_v6 }
 0xdc6   :  { %v1244_v7 = vadd.f32 1e-05, %v1243_v11 }
 0xdc7   :  { %v1254_v10 = vpop.permute.xlu0 %1253 }
 0xdc8   :  { %1912 = vrsqrt.f32 %v1244_v7 }
 0xdd2   :  { %v1913_v8 = vpop.eup %1912 }
 0xdd3   :  { %v1246_v9 = vmul.f32 %v1913_v8, %v1238_v51 }
 0xdd5   :  { %v1251_v12 = vmul.f32 %v1250_v57, %v1246_v9 }
 0xdd7   :  { %v1256_v13 = vadd.f32 %v1254_v10, %v1251_v12 }
 0xdd9   :  { %1672 = vmatmul.mubr.msk.f32.vlgmr.msra.gmra.mrb[12].mxu0 %vm205_vm1, %v1256_v13 }
 0xeac   :  { %v1330_v16 = vpop.f32.mrb[12].mxu0 }
 0xead   :  { %v1331_v45 = vadd.f32 %v1330_v16, %v1260_v15  ;;  %v1673_v17 = vpop.f32.mrb[13].mxu0 }
 0xeaf   :  { %1334 = vst [vmem:[#allocation7] sm:$0x3] %v1331_v45 }
 0xeb0   :  { %1969 = shalt.err (!%p1966_p6)
}
 0xeb1   :  { %s1970_s15 = scalar_lea.hbm %s2359_s7, 32 }
 0xeb2   :  { %p1971_p7 = scmp.ne.s32.totalorder %s2359_s7, %s1970_s15  ;;  %p1974_p8 = scmp.lt.u32.totalorder %s1970_s15, %s2359_s7 }
 0xeb4   :  { %p1976_p9 = pnand %p1974_p8, %p1971_p7 }
 0xeb6   :  { %1979 = shalt.err (!%p1976_p9)
}
 0xeb7   :  { %1344 = dma.vmem_to_hbm [thread:$0]  %s1342_s13, 32, %s2359_s7, [#allocation4]  }
 0xeb8   :  { %1984 = dma.done.wait [#allocation4], 32  }
 0xeb9   :  { %1985 = vsyncadd [#allocation4], 4294967264 }
 0xeba   :  { %1348 = vsyncpa [#allocation3], 1 }
 0xebb   :  { %1349 = vsyncpa [#allocation6], 1 }
 0xebc   :  { %1350 = vsyncpa [#allocation4], 1 }

</bundles_post_ra>
